<compile_context>
chip_gen: v6e
topology: v6e:2x2x1
jax: 0.10.0
libtpu: 0.0.40
codegen_flags: <defaults>
</compile_context>

<pallas_src>
import functools

import jax
import jax.numpy as jnp
from jax.experimental import pallas as pl
from jax.experimental.pallas import tpu as pltpu


def _round_up(x, m):
    return (x + m - 1) // m * m


def _round_down(x, m):
    return (x // m) * m


def _gating_kernel(x_ref, w_ref, shift_ref, o_ref):
    # x_ref:     (C_in, TN)    one spatial tile of one batch element (channels on sublanes)
    # w_ref:     (C_out, C_in) BN-folded weight (resident: constant index_map)
    # shift_ref: (C_out, 1)    folded conv-bias + BN shift
    # o_ref:     (C_out, TN)   lane-dense output tile
    acc = jnp.dot(w_ref[...], x_ref[...], preferred_element_type=jnp.float32)
    acc = acc + shift_ref[...]
    o_ref[...] = jnp.maximum(acc, 0.0).astype(o_ref.dtype)


def _vmem_budget_bytes():
    """~75% of this generation's physical VMEM (64 MiB v7x, 128 MiB v5e/v6e)."""
    cap = None
    try:
        info = pltpu.get_tpu_info()
        cap = getattr(info, "vmem_capacity_bytes", None)
    except Exception:
        cap = None
    if not cap:
        cap = 64 * 1024 * 1024          # conservative fallback (v7x-sized)
    return int(cap) * 3 // 4            # headroom for internal scratch / semaphores


def _choose_tile(n, s, c_in, c_out, itemsize, vmem_budget):
    """Largest 128-multiple spatial tile whose double-buffered footprint fits the
    VMEM budget, then guarantee >= 2 total grid steps (v7x has 2 TensorCores)."""
    # Resident (constant-index) weight + shift; count double-buffered to be safe.
    resident = 2 * (c_in * c_out + c_out) * 4
    # Double-buffered x block + out block, per spatial column.
    per_col = 2 * (c_in + c_out) * itemsize
    tn_cap = max(_round_down((vmem_budget - resident) // per_col, 128), 128)
    tn = min(_round_up(s, 128), tn_cap)

    # Enforce >= 2 grid steps so both v7x TensorCores get work. Costs at most one
    # extra ~0.35us step on single-TC v5e/v6e, so applied unconditionally.
    if n * pl.cdiv(s, tn) < 2:
        half = _round_up(pl.cdiv(s, 2), 128)
        if pl.cdiv(s, half) >= 2:
            tn = half
    return tn


@functools.partial(jax.jit, static_argnames=("tn", "vmem_limit_bytes"))
def _run(x, w, b, gamma, beta, running_mean, running_var, eps, tn, vmem_limit_bytes):
    n, c_in, d, h, wd = x.shape
    c_out = w.shape[0]
    s = d * h * wd

    # Fold BatchNorm (inference) + conv bias into weight / per-channel shift:
    #   W' = W * bn_scale[:, None],  shift' = b*bn_scale + beta - mean*bn_scale
    bn_scale = gamma / jnp.sqrt(running_var + eps)                  # (C_out,)
    w_mat = w.reshape(c_out, c_in) * bn_scale[:, None]              # (C_out, C_in)
    shift = (b * bn_scale + beta - running_mean * bn_scale).reshape(c_out, 1)

    # NCDHW -> (N, C_in, S): pure reshape, no transpose / extra HBM pass.
    x3 = x.reshape(n, c_in, s)

    grid = (n, pl.cdiv(s, tn))

    itemsize = jnp.dtype(x.dtype).itemsize
    cost = pl.CostEstimate(
        flops=2 * n * s * c_in * c_out,
        transcendentals=0,
        bytes_accessed=(n * c_in * s * itemsize             # x
                        + c_out * c_in * 4 + c_out * 4      # weight + shift
                        + n * c_out * s * itemsize),        # output
    )

    out3 = pl.pallas_call(
        _gating_kernel,
        out_shape=jax.ShapeDtypeStruct((n, c_out, s), x.dtype),
        grid_spec=pltpu.PrefetchScalarGridSpec(
            num_scalar_prefetch=0,
            grid=grid,
            in_specs=[
                # x tile: batch dim squeezed, channels on sublanes, spatial on lanes.
                pl.BlockSpec((None, c_in, tn), lambda bi, ji: (bi, 0, ji)),
                # Weight + shift: constant index_map -> resident across grid steps.
                pl.BlockSpec((c_out, c_in), lambda bi, ji: (0, 0)),
                pl.BlockSpec((c_out, 1), lambda bi, ji: (0, 0)),
            ],
            out_specs=pl.BlockSpec((None, c_out, tn), lambda bi, ji: (bi, 0, ji)),
        ),
        compiler_params=pltpu.CompilerParams(
            dimension_semantics=("parallel", "parallel"),
            vmem_limit_bytes=vmem_limit_bytes),
        cost_estimate=cost,
    )(x3, w_mat, shift)

    # (N, C_out, S) -> NCDHW: again a pure reshape.
    return out3.reshape(n, c_out, d, h, wd)


def unet_grid_gating_signal3(x, w, b, gamma, beta, running_mean, running_var,
                             eps=1e-5):
    """x: (N, C_in, D, H, W) float32; returns (N, C_out, D, H, W) float32."""
    n, c_in, d, h, wd = x.shape
    c_out = w.shape[0]
    s = d * h * wd
    itemsize = jnp.dtype(x.dtype).itemsize

    vmem_budget = _vmem_budget_bytes()
    tn = _choose_tile(n, s, c_in, c_out, itemsize, vmem_budget)

    # Raise scoped-VMEM limit above the 16/32 MiB defaults so the chosen tile is
    # accepted; keep it within the per-generation budget (headroom already baked in).
    footprint = (2 * (c_in + c_out) * tn * itemsize
                 + 2 * (c_in * c_out + c_out) * 4)
    vmem_limit_bytes = int(min(vmem_budget, max(footprint + (4 << 20), 32 << 20)))

    return _run(x, w, b, gamma, beta, running_mean, running_var,
                eps, tn=tn, vmem_limit_bytes=vmem_limit_bytes)


def _reference(x, w, b, gamma, beta, running_mean, running_var, eps=1e-5):
    # Pure-JAX reference of the same forward (1x1x1 conv + BN(eval) + ReLU).
    c_out, c_in = w.shape[0], w.shape[1]
    y = jnp.einsum("ncdhw,oc->nodhw", x, w.reshape(c_out, c_in)) \
        + b.reshape(1, c_out, 1, 1, 1)
    scale = (gamma / jnp.sqrt(running_var + eps)).reshape(1, c_out, 1, 1, 1)
    shift = (beta - running_mean * gamma / jnp.sqrt(running_var + eps)).reshape(
        1, c_out, 1, 1, 1)
    return jnp.maximum(y * scale + shift, 0.0)


if __name__ == "__main__":
    key = jax.random.PRNGKey(0)
    k_x, k_w, k_b, k_g, k_be, k_m, k_v = jax.random.split(key, 7)

    # Small shapes consistent with the module: N=2, C_in=4, C_out=8, D=4, H=8, W=8
    N, C_IN, C_OUT, D, H, W = 2, 4, 8, 4, 8, 8

    x = jax.random.normal(k_x, (N, C_IN, D, H, W), dtype=jnp.float32)

    # Deterministic parameter init (synthetic; not a checkpoint load).
    w = 0.1 * jax.random.normal(k_w, (C_OUT, C_IN, 1, 1, 1), dtype=jnp.float32)
    b = 0.05 * jax.random.normal(k_b, (C_OUT,), dtype=jnp.float32)
    gamma = 1.0 + 0.1 * jax.random.normal(k_g, (C_OUT,), dtype=jnp.float32)
    beta = 0.1 * jax.random.normal(k_be, (C_OUT,), dtype=jnp.float32)
    running_mean = 0.1 * jax.random.normal(k_m, (C_OUT,), dtype=jnp.float32)
    running_var = jnp.abs(1.0 + 0.1 * jax.random.normal(k_v, (C_OUT,),
                                                        dtype=jnp.float32))

    out = unet_grid_gating_signal3(x, w, b, gamma, beta,
                                   running_mean, running_var)
    out = jax.block_until_ready(out)

    ref = _reference(x, w, b, gamma, beta, running_mean, running_var)
    assert out.shape == (N, C_OUT, D, H, W)
    assert jnp.allclose(out, ref, atol=1e-5, rtol=1e-5)

    print("KERNEL_OK")
</pallas_src>

<mosaic_0001>
module attributes {stable_mosaic.version = 11 : i64} {
  func.func @_gating_kernel(%arg0: i32, %arg1: i32, %arg2: memref<1x4x256xf32, #tpu.memory_space<vmem>>, %arg3: memref<8x4xf32, #tpu.memory_space<vmem>>, %arg4: memref<8x1xf32, #tpu.memory_space<vmem>>, %arg5: memref<1x8x256xf32, #tpu.memory_space<vmem>>) attributes {dimension_semantics = [#tpu.dimension_semantics<parallel>, #tpu.dimension_semantics<parallel>], iteration_bounds = array<i64: 2, 1>, scalar_prefetch = 0 : i64, scratch_operands = 0 : i64, tpu.core_type = #tpu.core_type<tc>, window_params = [{transform_indices = @transform_0, window_bounds = array<i64: 1, 4, 256>}, {pipeline_mode = #tpu.pipeline_mode<synchronous>, transform_indices = @transform_1, window_bounds = array<i64: 8, 4>}, {pipeline_mode = #tpu.pipeline_mode<synchronous>, transform_indices = @transform_2, window_bounds = array<i64: 8, 1>}, {transform_indices = @transform_3, window_bounds = array<i64: 1, 8, 256>}]} {
    %c0 = arith.constant 0 : index
    %c0_0 = arith.constant 0 : index
    %0 = vector.load %arg3[%c0, %c0_0] : memref<8x4xf32, #tpu.memory_space<vmem>>, vector<8x4xf32>
    %c0_1 = arith.constant 0 : index
    %c0_2 = arith.constant 0 : index
    %c0_3 = arith.constant 0 : index
    %1 = vector.load %arg2[%c0_1, %c0_2, %c0_3] : memref<1x4x256xf32, #tpu.memory_space<vmem>>, vector<1x4x256xf32>
    %2 = vector.shape_cast %1 : vector<1x4x256xf32> to vector<4x256xf32>
    %cst = arith.constant dense<0.000000e+00> : vector<8x256xf32>
    %3 = tpu.matmul %0, %2, %cst {dimension_numbers = #tpu.dot_dimension_numbers<[1], [0], [0], [1], [0, 0, 1, 1], [], []>} : vector<8x4xf32>, vector<4x256xf32>, vector<8x256xf32> -> vector<8x256xf32>
    %c0_4 = arith.constant 0 : index
    %c0_5 = arith.constant 0 : index
    %4 = vector.load %arg4[%c0_4, %c0_5] : memref<8x1xf32, #tpu.memory_space<vmem>>, vector<8x1xf32>
    %5 = vector.broadcast %4 : vector<8x1xf32> to vector<8x256xf32>
    %6 = arith.addf %3, %5 : vector<8x256xf32>
    %cst_6 = arith.constant 0.000000e+00 : f32
    %7 = vector.broadcast %cst_6 : f32 to vector<8x256xf32>
    %8 = arith.maximumf %6, %7 : vector<8x256xf32>
    %c0_7 = arith.constant 0 : index
    %c0_8 = arith.constant 0 : index
    %c0_9 = arith.constant 0 : index
    %9 = vector.load %arg5[%c0_7, %c0_8, %c0_9] : memref<1x8x256xf32, #tpu.memory_space<vmem>>, vector<1x8x256xf32>
    %10 = vector.shape_cast %9 : vector<1x8x256xf32> to vector<8x256xf32>
    %11 = vector.shape_cast %8 : vector<8x256xf32> to vector<1x8x256xf32>
    tpu.vector_store %arg5[%c0_7, %c0_8, %c0_9], %11 {strides = array<i32>} : memref<1x8x256xf32, #tpu.memory_space<vmem>>, vector<1x8x256xf32>,
    return
  }
  func.func @transform_0(%arg0: i32, %arg1: i32) -> (i32, i32, i32) {
    %c0_i32 = arith.constant 0 : i32
    %c0_i32_0 = arith.constant 0 : i32
    return %arg0, %c0_i32, %arg1 : i32, i32, i32
  }
  func.func @transform_1(%arg0: i32, %arg1: i32) -> (i32, i32) {
    %c0_i32 = arith.constant 0 : i32
    %c0_i32_0 = arith.constant 0 : i32
    %c0_i32_1 = arith.constant 0 : i32
    return %c0_i32, %c0_i32_0 : i32, i32
  }
  func.func @transform_2(%arg0: i32, %arg1: i32) -> (i32, i32) {
    %c0_i32 = arith.constant 0 : i32
    %c0_i32_0 = arith.constant 0 : i32
    %c0_i32_1 = arith.constant 0 : i32
    return %c0_i32, %c0_i32_0 : i32, i32
  }
  func.func @transform_3(%arg0: i32, %arg1: i32) -> (i32, i32, i32) {
    %c0_i32 = arith.constant 0 : i32
    %c0_i32_0 = arith.constant 0 : i32
    return %arg0, %c0_i32, %arg1 : i32, i32, i32
  }
}

</mosaic_0001>

<bundles_post_ra>
// kernel: _run.1
= control target key start
LH: loop header
LB: loop body
LE: loop exit
PB: predicated region body
PF: predicated region fallthrough
CT: control target
= control target key end

     0   :  { %s481_s12 = smov 0   ;;  %s483_s13 = smov 0   ;;  %s520_s0 = inlined_call_operand.vmem [shape: f32[2,4,256], index: 0, kind: input, shape index: {}]   ;;  %s521_s1 = inlined_call_operand.vmem [shape: f32[8,4], index: 1, kind: input, shape index: {}]   ;;  %s522_s2 = inlined_call_operand.vmem [shape: f32[8,1], index: 2, kind: input, shape index: {}]   ;;  %s523_s3 = inlined_call_operand.vmem [shape: f32[2,8,256], index: 3, kind: output, shape index: {}]  }
   0x1   :  { %s485_s14 = smov 0  }
   0x2 LB: > { %s25_s15 = sadd.s32 1, %s453_s13  ;;  %p395_p0 = scmp.ge.s32.totalorder %s457_s14, 1  ;;  %s457_s14 = sphi %s485_s14, %s13_s14   ;;  %s453_s13 = sphi %s483_s13, %s525_s13   ;;  %s449_s12 = sphi %s481_s12, %s524_s12  }
   0x3   : > { %p27_p1 = scmp.ge.s32.totalorder %s25_s15, 2  ;;  %p158_p2 = scmp.lt.s32.totalorder %s457_s14, 3 }
   0x5   : > { %s527_s15 = smov (%p27_p1, %s25_s15), 0  ;;  %p159_p3 = pnand %p395_p0, %p158_p2 }
   0x6   : > { %p191_p4 = scmp.lt.s32.totalorder (!%p159_p3), %s449_s12, 1 }
   0x7   : > { %162 = sbr.rel (%p159_p3) target bundleno = 220 (0xdc), region = 32 }
   0xc   : > { %v459_v0 = vmov 0.0   ;;  %v460_v1 = vmov 0   ;;  %v212_v2 = vld [vmem:[%s522_s2] sm:$0xff]  ;;  %s529_s12 = smov (!%p191_p4, %s449_s12), 1  ;;  %vm224_vm0 = vcmask 1043456   ;;  %vm220_vm1 = vcmask 31744  }
   0xd   : > { %293 = vmatprep.mubr.f32.mxu0 %v459_v0  ;;  %433 = vset.pattern.permute.xlu0 %v460_v1  ;;  %s405_s18 = sshll.u32 %s529_s12, 3  ;;  %v210_v5 = vld [vmem:[%s521_s1] sm:$0xff]  ;;  %s406_s24 = sshll.u32 %s529_s12, 4 }
   0xe   : > { %215 = vperm.xlu0 %433, %v212_v2   ;;  %s198_s21 = scalar_lea.vmem %s520_s0, %s405_s18  ;;  %s208_s27 = scalar_lea.vmem %s523_s3, %s406_s24 }
   0xf   : > { %v211_v3 = vld [vmem:[%s198_s21] sm:$0xff] }
  0x10   : > { %v219_v4 = vcombine.high %v211_v3, %v211_v3 }
  0x12   : > { %400 = vmatprep.subr.msk.mxu0 %vm224_vm0, %v219_v4 }
  0x13   : > { %401 = vmatpush1.msk.msra.mxu0 %vm224_vm0, %v211_v3 }
  0x14   : > { %402 = vmatmul.mubr.msk.f32.vlgmr.msra.gmra.mxu0 %vm220_vm1, %v210_v5 }
  0x89   : > { %v216_v6 = vpop.permute.xlu0 %215 }
  0xd4   : > { %v295_v7 = vpop.f32.mrf.mxu0 }
  0xd5   : > { %v296_v8 = vadd.f32 %v295_v7, %v216_v6 }
  0xd6   : > { %v297_v9 = vpop.f32.mrf.mxu0 }
  0xd7   : > { %v300_v10 = vmax.f32 %v296_v8, 0.0  ;;  %v298_v11 = vadd.f32 %v297_v9, %v216_v6 }
  0xd9   : > { %302 = vst [vmem:[%s208_s27] sm:$0xff] %v300_v10  ;;  %v301_v12 = vmax.f32 %v298_v11, 0.0 }
  0xdb   : > { %303 = vst [vmem:[%s208_s27 + $0x8] sm:$0xff] %v301_v12 }
  0xdc PF: > { %s13_s14 = sadd.s32 1, %s457_s14   ;;  %s524_s12 = smov %s453_s13 }
  0xdd   : > { %p10_p5 = scmp.ge.s32.totalorder %s13_s14, 4   ;;  %s525_s13 = smov %s527_s15 }
  0xdf   :  { %12 = sbr.rel (!%p10_p5) target bundleno = 2 (0x2), region = 62 }

</bundles_post_ra>
